<compile_context>
chip_gen: v7x
topology: tpu7x:2x2x1
jax: 0.10.0
libtpu: 0.0.40
codegen_flags: <defaults>
</compile_context>

<pallas_src>
import functools

import jax
import jax.numpy as jnp
from jax.experimental import pallas as pl
from jax.experimental.pallas import tpu as pltpu


def ff_kernel(x_ref, w1_ref, b1_ref, w2_ref, b2_ref, o_ref):
    # x_ref: (tp, P*E_pad) [compute dtype]; w1_ref: (P*E_pad, P*H_pad)
    # b1_ref: (1, P*H_pad) f32; w2_ref: (P*H_pad, P*E_pad); b2_ref: (1, P*E_pad) f32
    x = x_ref[...]
    h = jnp.dot(x, w1_ref[...], preferred_element_type=jnp.float32)
    h = jnp.maximum(h + b1_ref[...], 0.0)          # f32 bias + ReLU epilogue
    h = h.astype(w2_ref.dtype)                      # back to MXU-native dtype
    out = jnp.dot(h, w2_ref[...], preferred_element_type=jnp.float32) + b2_ref[...]
    o_ref[...] = out.astype(o_ref.dtype)


def _round_up(x, m):
    return ((x + m - 1) // m) * m


def _cdiv(a, b):
    return -(-a // b)


def _chip_hints():
    """Best-effort chip hints: (MXU lane width for packing, TensorCores/chip)."""
    lane_pack, n_tc = 128, 1
    try:
        kind = jax.devices()[0].device_kind.lower()
    except Exception:  # unusual backend: keep conservative defaults
        return lane_pack, n_tc
    if "v6" in kind or "v7" in kind:
        lane_pack = 256      # 2x256x256 MXU tiles on v6e / v7x
    if "v7" in kind or "v4" in kind or "v5p" in kind:
        n_tc = 2             # two TensorCores share one chip's grid
    return lane_pack, n_tc


def _choose_packing(E, lane_pack):
    """Return (E_pad, P): pad E and/or fold P rows so the packed feature width
    P*E_pad is a lane-dense multiple of 128 (no masked vst on the output)."""
    if E % 128 == 0:
        return E, 1
    if E < lane_pack and lane_pack % E == 0:
        return E, lane_pack // E
    if E < 128 and 128 % E == 0:
        return E, 128 // E
    return _round_up(E, 128), 1     # fallback: zero-pad features to a 128-multiple


def _pick_tiles(M, P, tm, n_tc, bytes_per_packed_row, vmem_budget):
    """Row tile from a step count (small padding) and a VMEM budget cap."""
    row_align = 8 * P
    tp_cap = max(8, (vmem_budget // max(bytes_per_packed_row, 1)) // 8 * 8)
    tm_target = max(row_align, min(_round_up(tm, row_align), tp_cap * P))
    steps = _cdiv(M, tm_target)
    if n_tc > 1:
        # >=4 steps per TensorCore (when there is enough work) so BlockSpec
        # double-buffering overlaps DMA with compute on multi-TC chips.
        min_rows_per_step = max(row_align, 512)
        max_useful = max(1, M // min_rows_per_step)
        steps = max(steps, min(4 * n_tc, max_useful))
    tm_eff = _round_up(_cdiv(M, steps), row_align)
    M_pad = _round_up(M, tm_eff)
    return tm_eff, M_pad


def pack_ff_params(w1, b1, w2, b2, *, lane_pack=None, compute_dtype=jnp.bfloat16):
    """Pre-pack FF weights (pad + block-diagonalize + cast). Call once; reuse
    across ff_network_apply calls so the hot path is a single pallas_call.

    Weights stored as (in_features, out_features), i.e. transposed vs torch.
    """
    E, H = w1.shape
    assert w2.shape == (H, E) and b1.shape == (H,) and b2.shape == (E,)
    if lane_pack is None:
        lane_pack, _ = _chip_hints()
    E_pad, P = _choose_packing(E, lane_pack)
    H_pad = _round_up(H, 128)

    # Zero-padding is bit-identical: padded x/hidden columns see zero weights,
    # relu(0)=0, and padded output columns are sliced off by the caller.
    if E_pad != E:
        w1 = jnp.pad(w1, ((0, E_pad - E), (0, 0)))
        w2 = jnp.pad(w2, ((0, 0), (0, E_pad - E)))
        b2 = jnp.pad(b2, (0, E_pad - E))
    if H_pad != H:
        w1 = jnp.pad(w1, ((0, 0), (0, H_pad - H)))
        b1 = jnp.pad(b1, (0, H_pad - H))
        w2 = jnp.pad(w2, ((0, H_pad - H), (0, 0)))

    # Block-diagonal kron(I_P, W): P consecutive rows fold into one lane-dense
    # packed row while the kernel stays two plain MXU matmuls.
    eye = jnp.eye(P, dtype=w1.dtype)
    w1_big = jnp.kron(eye, w1).astype(compute_dtype)            # (P*E_pad, P*H_pad)
    w2_big = jnp.kron(eye, w2).astype(compute_dtype)            # (P*H_pad, P*E_pad)
    b1_big = jnp.tile(b1.reshape(1, H_pad), (1, P)).astype(jnp.float32)
    b2_big = jnp.tile(b2.reshape(1, E_pad), (1, P)).astype(jnp.float32)

    packed = (w1_big, b1_big, w2_big, b2_big)
    meta = dict(E=E, E_pad=E_pad, P=P)
    return packed, meta


@functools.partial(jax.jit, static_argnames=("E", "E_pad", "P", "tm"))
def ff_network_apply(x, w1_big, b1_big, w2_big, b2_big, *, E, E_pad, P, tm=8192):
    """x: (..., E). Applies Linear(E->H) -> ReLU -> Linear(H->E) on last dim
    using pre-packed weights from pack_ff_params."""
    orig_shape = x.shape
    out_dtype = x.dtype
    compute_dtype = w1_big.dtype

    EP, HP = w1_big.shape                      # packed feature / hidden widths
    assert EP == P * E_pad and w2_big.shape == (HP, EP)

    x2d = x.reshape(-1, E).astype(compute_dtype)
    M = x2d.shape[0]

    _, n_tc = _chip_hints()
    cd_size = jnp.dtype(compute_dtype).itemsize
    out_size = jnp.dtype(out_dtype).itemsize
    # Rough per-step VMEM bytes per packed row: f32 h + compute-dtype copy of h,
    # plus double-buffered x and out tiles.  Budget kept well under the default
    # scoped VMEM limit on every generation (incl. v7x's smaller VMEM).
    bytes_per_packed_row = HP * (4 + cd_size) + 2 * EP * (cd_size + out_size)
    tm_eff, M_pad = _pick_tiles(M, P, tm, n_tc, bytes_per_packed_row,
                                vmem_budget=12 * 1024 * 1024)

    if E_pad != E:
        x2d = jnp.pad(x2d, ((0, 0), (0, E_pad - E)))
    if M_pad != M:
        x2d = jnp.pad(x2d, ((0, M_pad - M), (0, 0)))

    MP, tp = M_pad // P, tm_eff // P
    x_packed = x2d.reshape(MP, EP)

    cost = pl.CostEstimate(
        flops=int(4 * MP * EP * HP),
        transcendentals=0,
        bytes_accessed=int(MP * EP * (cd_size + out_size)
                           + 2 * EP * HP * cd_size + 4 * (HP + EP)),
    )

    out_packed = pl.pallas_call(
        ff_kernel,
        out_shape=jax.ShapeDtypeStruct((MP, EP), out_dtype),
        grid_spec=pltpu.PrefetchScalarGridSpec(
            num_scalar_prefetch=0,
            grid=(MP // tp,),
            in_specs=[
                pl.BlockSpec((tp, EP), lambda i: (i, 0)),   # packed x rows (streamed)
                pl.BlockSpec((EP, HP), lambda i: (0, 0)),   # W1 (block-diag, resident)
                pl.BlockSpec((1, HP), lambda i: (0, 0)),    # b1 (f32)
                pl.BlockSpec((HP, EP), lambda i: (0, 0)),   # W2 (block-diag, resident)
                pl.BlockSpec((1, EP), lambda i: (0, 0)),    # b2 (f32)
            ],
            out_specs=pl.BlockSpec((tp, EP), lambda i: (i, 0)),
        ),
        compiler_params=pltpu.CompilerParams(
            dimension_semantics=("parallel",),
        ),
        cost_estimate=cost,
    )(x_packed, w1_big, b1_big, w2_big, b2_big)

    out = out_packed.reshape(M_pad, E_pad)[:M, :E]
    return out.reshape(orig_shape).astype(out_dtype)


def ff_network(x, w1, b1, w2, b2, *, compute_dtype=jnp.bfloat16, tm=8192):
    """One-shot convenience wrapper (re-packs weights every call; prefer
    pack_ff_params + ff_network_apply for repeated calls)."""
    packed, meta = pack_ff_params(w1, b1, w2, b2, compute_dtype=compute_dtype)
    return ff_network_apply(x, *packed, **meta, tm=tm)


def init_params(key, embedding_s, h_units=116, dtype=jnp.float32):
    """Deterministic init mimicking nn.Linear defaults (uniform +-1/sqrt(fan_in)).

    Weights are stored as (in_features, out_features), i.e. transposed vs torch.
    """
    k1, k2, k3, k4 = jax.random.split(key, 4)
    bound1 = 1.0 / (embedding_s ** 0.5)
    bound2 = 1.0 / (h_units ** 0.5)
    w1 = jax.random.uniform(k1, (embedding_s, h_units), dtype, -bound1, bound1)
    b1 = jax.random.uniform(k2, (h_units,), dtype, -bound1, bound1)
    w2 = jax.random.uniform(k3, (h_units, embedding_s), dtype, -bound2, bound2)
    b2 = jax.random.uniform(k4, (embedding_s,), dtype, -bound2, bound2)
    return w1, b1, w2, b2


if __name__ == "__main__":
    key = jax.random.PRNGKey(0)
    kx, kp = jax.random.split(key)

    batch, seq, embedding_s, h_units = 2, 8, 32, 116
    x = jax.random.normal(kx, (batch, seq, embedding_s), dtype=jnp.float32)
    w1, b1, w2, b2 = init_params(kp, embedding_s, h_units)

    # Hoisted path: pack weights once, then a single pallas_call per forward.
    packed, meta = pack_ff_params(w1, b1, w2, b2)
    out = ff_network_apply(x, *packed, **meta)
    out = jax.block_until_ready(out)

    # Reference check in plain JAX (f32, unpadded weights).  Tolerance is
    # loosened because the kernel's matmul inputs are bf16 (f32 accumulation
    # and f32 bias/ReLU epilogue keep the error small).
    ref = jnp.maximum(x @ w1 + b1, 0.0) @ w2 + b2
    assert out.shape == x.shape and out.dtype == x.dtype
    assert jnp.allclose(out, ref, atol=5e-2, rtol=5e-2), "mismatch vs reference"

    print("KERNEL_OK")
</pallas_src>

<mosaic_0001>
module attributes {stable_mosaic.version = 11 : i64} {
  func.func @ff_kernel(%arg0: i32, %arg1: memref<8x128xbf16, #tpu.memory_space<vmem>>, %arg2: memref<128x512xbf16, #tpu.memory_space<vmem>>, %arg3: memref<1x512xf32, #tpu.memory_space<vmem>>, %arg4: memref<512x128xbf16, #tpu.memory_space<vmem>>, %arg5: memref<1x128xf32, #tpu.memory_space<vmem>>, %arg6: memref<8x128xf32, #tpu.memory_space<vmem>>) attributes {dimension_semantics = [#tpu.dimension_semantics<parallel>], iteration_bounds = array<i64: 1>, scalar_prefetch = 0 : i64, scratch_operands = 0 : i64, tpu.core_type = #tpu.core_type<tc>, window_params = [{transform_indices = @transform_0, window_bounds = array<i64: 8, 128>}, {pipeline_mode = #tpu.pipeline_mode<synchronous>, transform_indices = @transform_1, window_bounds = array<i64: 128, 512>}, {pipeline_mode = #tpu.pipeline_mode<synchronous>, transform_indices = @transform_2, window_bounds = array<i64: 1, 512>}, {pipeline_mode = #tpu.pipeline_mode<synchronous>, transform_indices = @transform_3, window_bounds = array<i64: 512, 128>}, {pipeline_mode = #tpu.pipeline_mode<synchronous>, transform_indices = @transform_4, window_bounds = array<i64: 1, 128>}, {transform_indices = @transform_5, window_bounds = array<i64: 8, 128>}]} {
    %c0 = arith.constant 0 : index
    %c0_0 = arith.constant 0 : index
    %0 = vector.load %arg1[%c0, %c0_0] : memref<8x128xbf16, #tpu.memory_space<vmem>>, vector<8x128xbf16>
    %c0_1 = arith.constant 0 : index
    %c0_2 = arith.constant 0 : index
    %1 = vector.load %arg2[%c0_1, %c0_2] : memref<128x512xbf16, #tpu.memory_space<vmem>>, vector<128x512xbf16>
    %cst = arith.constant dense<0.000000e+00> : vector<8x512xf32>
    %2 = tpu.matmul %0, %1, %cst {dimension_numbers = #tpu.dot_dimension_numbers<[1], [0], [0], [1], [0, 0, 1, 1], [], []>} : vector<8x128xbf16>, vector<128x512xbf16>, vector<8x512xf32> -> vector<8x512xf32>
    %c0_3 = arith.constant 0 : index
    %c0_4 = arith.constant 0 : index
    %3 = vector.load %arg3[%c0_3, %c0_4] : memref<1x512xf32, #tpu.memory_space<vmem>>, vector<1x512xf32>
    %4 = vector.broadcast %3 : vector<1x512xf32> to vector<8x512xf32>
    %5 = arith.addf %2, %4 : vector<8x512xf32>
    %cst_5 = arith.constant 0.000000e+00 : f32
    %6 = vector.broadcast %cst_5 : f32 to vector<8x512xf32>
    %7 = arith.maximumf %5, %6 : vector<8x512xf32>
    %8 = arith.truncf %7 : vector<8x512xf32> to vector<8x512xbf16>
    %c0_6 = arith.constant 0 : index
    %c0_7 = arith.constant 0 : index
    %9 = vector.load %arg4[%c0_6, %c0_7] : memref<512x128xbf16, #tpu.memory_space<vmem>>, vector<512x128xbf16>
    %cst_8 = arith.constant dense<0.000000e+00> : vector<8x128xf32>
    %10 = tpu.matmul %8, %9, %cst_8 {dimension_numbers = #tpu.dot_dimension_numbers<[1], [0], [0], [1], [0, 0, 1, 1], [], []>} : vector<8x512xbf16>, vector<512x128xbf16>, vector<8x128xf32> -> vector<8x128xf32>
    %c0_9 = arith.constant 0 : index
    %c0_10 = arith.constant 0 : index
    %11 = vector.load %arg5[%c0_9, %c0_10] : memref<1x128xf32, #tpu.memory_space<vmem>>, vector<1x128xf32>
    %12 = vector.broadcast %11 : vector<1x128xf32> to vector<8x128xf32>
    %13 = arith.addf %10, %12 : vector<8x128xf32>
    %c0_11 = arith.constant 0 : index
    %c0_12 = arith.constant 0 : index
    %14 = vector.load %arg6[%c0_11, %c0_12] : memref<8x128xf32, #tpu.memory_space<vmem>>, vector<8x128xf32>
    tpu.vector_store %arg6[%c0_11, %c0_12], %13 {strides = array<i32>} : memref<8x128xf32, #tpu.memory_space<vmem>>, vector<8x128xf32>,
    return
  }
  func.func @transform_0(%arg0: i32) -> (i32, i32) {
    %c0_i32 = arith.constant 0 : i32
    %c0_i32_0 = arith.constant 0 : i32
    return %arg0, %c0_i32 : i32, i32
  }
  func.func @transform_1(%arg0: i32) -> (i32, i32) {
    %c0_i32 = arith.constant 0 : i32
    %c0_i32_0 = arith.constant 0 : i32
    %c0_i32_1 = arith.constant 0 : i32
    return %c0_i32, %c0_i32_0 : i32, i32
  }
  func.func @transform_2(%arg0: i32) -> (i32, i32) {
    %c0_i32 = arith.constant 0 : i32
    %c0_i32_0 = arith.constant 0 : i32
    %c0_i32_1 = arith.constant 0 : i32
    return %c0_i32, %c0_i32_0 : i32, i32
  }
  func.func @transform_3(%arg0: i32) -> (i32, i32) {
    %c0_i32 = arith.constant 0 : i32
    %c0_i32_0 = arith.constant 0 : i32
    %c0_i32_1 = arith.constant 0 : i32
    return %c0_i32, %c0_i32_0 : i32, i32
  }
  func.func @transform_4(%arg0: i32) -> (i32, i32) {
    %c0_i32 = arith.constant 0 : i32
    %c0_i32_0 = arith.constant 0 : i32
    %c0_i32_1 = arith.constant 0 : i32
    return %c0_i32, %c0_i32_0 : i32, i32
  }
  func.func @transform_5(%arg0: i32) -> (i32, i32) {
    %c0_i32 = arith.constant 0 : i32
    %c0_i32_0 = arith.constant 0 : i32
    return %arg0, %c0_i32 : i32, i32
  }
}

</mosaic_0001>

<bundles_post_ra>
// kernel: ff_network_apply.1
= control target key start
LH: loop header
LB: loop body
LE: loop exit
PB: predicated region body
PF: predicated region fallthrough
CT: control target
= control target key end

     0   :  { %10 = vsyncpa [#allocation3], 0  ;;  %s1021_s0 = inlined_call_operand.vmem [shape: bf16[8,128], index: 0, kind: input, shape index: {}]   ;;  %s1022_s1 = inlined_call_operand.hbm [shape: bf16[128,512], index: 1, kind: input, shape index: {}]   ;;  %s1023_s2 = inlined_call_operand.vmem [shape: f32[1,512], index: 2, kind: input, shape index: {}]   ;;  %s1024_s3 = inlined_call_operand.hbm [shape: bf16[512,128], index: 3, kind: input, shape index: {}]   ;;  %s1025_s4 = inlined_call_operand.vmem [shape: f32[1,128], index: 4, kind: input, shape index: {}]   ;;  %s1026_s5 = inlined_call_operand.vmem [shape: f32[8,128], index: 5, kind: output, shape index: {}]  }
   0x1   :  { %11 = vsyncpa [#allocation5], 0  ;;  %s948_s18 = smov [#allocation2]   ;;  %s900_s22 = scalar_lea.hbm %s1022_s1, 4096 }
   0x2   :  { %s19_s19 = sshll.u32 %s948_s18, 4  ;;  %p901_p0 = scmp.ne.s32.totalorder %s1022_s1, %s900_s22  ;;  %s20_s19 = int_to_ptr.vmem [resolvable:$true] %s19_s19 }
   0x3   :  { %p904_p1 = scmp.lt.u32.totalorder %s900_s22, %s1022_s1 }
   0x5   :  { %p906_p2 = pnand %p904_p1, %p901_p0 }
   0x7   :  { %909 = shalt.err (!%p906_p2)
}
   0x8   :  { %s910_s27 = scalar_lea.vmem %s20_s19, 4096  ;;  %p915_p4 = scmp.lt.s32.totalorder %s20_s19, %s20_s19 }
   0x9   :  { %p911_p3 = scmp.ne.s32.totalorder %s20_s19, %s910_s27  ;;  %p916_p5 = scmp.lt.s32.totalorder %s910_s27, %s910_s27 }
   0xb   :  { %p917_p6 = por %p916_p5, %p915_p4 }
   0xd   :  { %p918_p7 = pnand %p917_p6, %p911_p3 }
   0xf   :  { %921 = shalt.err (!%p918_p7)
}
  0x10   :  { %s949_s28 = smov 256   ;;  %s950_s29 = smov 16  }
  0x11   :  { %25 = dma.hbm_to_vmem [thread:$0]  %s1022_s1, 4096, %s20_s19, [#allocation3], %s949_s28, %s949_s28, %s950_s29  }
  0x12   :  { %s951_s7 = smov [#allocation4]   ;;  %s922_s11 = scalar_lea.hbm %s1024_s3, 4096 }
  0x13   :  { %s33_s8 = sshll.u32 %s951_s7, 4  ;;  %p923_p8 = scmp.ne.s32.totalorder %s1024_s3, %s922_s11  ;;  %s34_s8 = int_to_ptr.vmem [resolvable:$true] %s33_s8 }
  0x14   :  { %p926_p9 = scmp.lt.u32.totalorder %s922_s11, %s1024_s3 }
  0x16   :  { %p928_p10 = pnand %p926_p9, %p923_p8 }
  0x18   :  { %931 = shalt.err (!%p928_p10)
}
  0x19   :  { %s932_s16 = scalar_lea.vmem %s34_s8, 4096  ;;  %p937_p12 = scmp.lt.s32.totalorder %s34_s8, %s34_s8 }
  0x1a   :  { %p933_p11 = scmp.ne.s32.totalorder %s34_s8, %s932_s16  ;;  %p938_p13 = scmp.lt.s32.totalorder %s932_s16, %s932_s16 }
  0x1c   :  { %p939_p0 = por %p938_p13, %p937_p12 }
  0x1e   :  { %p940_p1 = pnand %p939_p0, %p933_p11 }
  0x20   :  { %943 = shalt.err (!%p940_p1)
}
  0x21   :  { %s952_s1 = smov 64   ;;  %s953_s17 = smov 4  }
  0x22   :  { %39 = dma.hbm_to_vmem [thread:$0]  %s1024_s3, 4096, %s34_s8, [#allocation5], %s952_s1, %s952_s1, %s953_s17  }
  0x23   :  { %944 = dma.done.wait [#allocation3], 4096  }
  0x24   :  { %945 = vsyncadd [#allocation3], 4294963200 }
  0x25   :  { %946 = dma.done.wait [#allocation5], 4096  }
  0x26   :  { %947 = vsyncadd [#allocation5], 4294963200  ;;  %v954_v0 = vmov 0   ;;  %v820_v1 = vld [vmem:[#allocation2 + $0x4] ss:$16 sps:$4 sm:$0xff]   ;;  %v872_v38 = vld [vmem:[#allocation4 + $0x48] sm:$0xff]  }
  0x27   :  { %296 = vmatprep.mubr.bf16.mxu0 %v954_v0  ;;  %337 = vmatprep.mubr.bf16.mxu1 %v954_v0  ;;  %v822_v2 = vld [vmem:[#allocation2 + $0xc] ss:$16 sps:$4 sm:$0xff]   ;;  %v824_v3 = vld [vmem:[#allocation2] ss:$16 sps:$4 sm:$0xff]   ;;  %v825_v4 = vld [vmem:[#allocation2 + $0x8] ss:$16 sps:$4 sm:$0xff]  }
  0x28   :  { %264 = vmatprep.subr.bf16.mxu0 %v820_v1  ;;  %305 = vmatprep.subr.bf16.mxu1 %v822_v2  ;;  %v826_v5 = vld [vmem:[#allocation2 + $0x24] ss:$16 sps:$4 sm:$0xff]   ;;  %v828_v6 = vld [vmem:[#allocation2 + $0x2c] ss:$16 sps:$4 sm:$0xff]   ;;  %v830_v7 = vld [vmem:[#allocation2 + $0x20] ss:$16 sps:$4 sm:$0xff]   ;;  %v84_v2 = vlaneseq }
  0x29   :  { %265 = vmatpush1.bf16.msra.mxu0 %v824_v3  ;;  %306 = vmatpush1.bf16.msra.mxu1 %v825_v4  ;;  %v831_v8 = vld [vmem:[#allocation2 + $0x28] ss:$16 sps:$4 sm:$0xff]   ;;  %v832_v9 = vld [vmem:[#allocation2 + $0x44] ss:$16 sps:$4 sm:$0xff]   ;;  %v834_v10 = vld [vmem:[#allocation2 + $0x4c] ss:$16 sps:$4 sm:$0xff]  }
  0x2a   :  { %266 = vmatprep.subr.bf16.mxu0 %v826_v5  ;;  %307 = vmatprep.subr.bf16.mxu1 %v828_v6  ;;  %v836_v11 = vld [vmem:[#allocation2 + $0x40] ss:$16 sps:$4 sm:$0xff]   ;;  %v837_v12 = vld [vmem:[#allocation2 + $0x48] ss:$16 sps:$4 sm:$0xff]   ;;  %v838_v13 = vld [vmem:[#allocation2 + $0x64] ss:$16 sps:$4 sm:$0xff]  }
  0x2b   :  { %v840_v14 = vld [vmem:[#allocation2 + $0x6c] ss:$16 sps:$4 sm:$0xff]   ;;  %v842_v15 = vld [vmem:[#allocation2 + $0x60] ss:$16 sps:$4 sm:$0xff]   ;;  %v843_v16 = vld [vmem:[#allocation2 + $0x68] ss:$16 sps:$4 sm:$0xff]  }
  0x2c   :  { %v844_v17 = vld [vmem:[#allocation2 + $0x84] ss:$16 sps:$4 sm:$0xff]   ;;  %v846_v18 = vld [vmem:[#allocation2 + $0x8c] ss:$16 sps:$4 sm:$0xff]   ;;  %v848_v19 = vld [vmem:[#allocation2 + $0x80] ss:$16 sps:$4 sm:$0xff]  }
  0x2d   :  { %267 = vmatpush1.bf16.msra.mxu0 %v830_v7  ;;  %308 = vmatpush1.bf16.msra.mxu1 %v831_v8  ;;  %v849_v20 = vld [vmem:[#allocation2 + $0x88] ss:$16 sps:$4 sm:$0xff]   ;;  %v850_v21 = vld [vmem:[#allocation2 + $0xa4] ss:$16 sps:$4 sm:$0xff]   ;;  %v852_v22 = vld [vmem:[#allocation2 + $0xac] ss:$16 sps:$4 sm:$0xff]  }
  0x2e   :  { %268 = vmatprep.subr.bf16.mxu0 %v832_v9  ;;  %309 = vmatprep.subr.bf16.mxu1 %v834_v10  ;;  %v854_v23 = vld [vmem:[#allocation2 + $0xa0] ss:$16 sps:$4 sm:$0xff]   ;;  %v855_v24 = vld [vmem:[#allocation2 + $0xa8] ss:$16 sps:$4 sm:$0xff]   ;;  %v856_v25 = vld [vmem:[#allocation2 + $0xc4] ss:$16 sps:$4 sm:$0xff]  }
  0x2f   :  { %v858_v26 = vld [vmem:[#allocation2 + $0xcc] ss:$16 sps:$4 sm:$0xff]   ;;  %v860_v27 = vld [vmem:[#allocation2 + $0xc0] ss:$16 sps:$4 sm:$0xff]   ;;  %v861_v28 = vld [vmem:[#allocation2 + $0xc8] ss:$16 sps:$4 sm:$0xff]  }
  0x30   :  { %v862_v29 = vld [vmem:[#allocation2 + $0xe4] ss:$16 sps:$4 sm:$0xff]   ;;  %v864_v30 = vld [vmem:[#allocation2 + $0xec] ss:$16 sps:$4 sm:$0xff]   ;;  %v866_v31 = vld [vmem:[#allocation2 + $0xe0] ss:$16 sps:$4 sm:$0xff]  }
  0x31   :  { %269 = vmatpush1.bf16.msra.mxu0 %v836_v11  ;;  %310 = vmatpush1.bf16.msra.mxu1 %v837_v12  ;;  %v867_v32 = vld [vmem:[#allocation2 + $0xe8] ss:$16 sps:$4 sm:$0xff]   ;;  %v868_v33 = vld [vmem:[#allocation4 + $0x40] sm:$0xff]   ;;  %v876_v42 = vld [vmem:[#allocation4 + $0x50] sm:$0xff]   ;;  %v85_v3 = vshrl.u32 %v84_v2, 7 }
  0x32   :  { %270 = vmatprep.subr.bf16.mxu0 %v838_v13  ;;  %311 = vmatprep.subr.bf16.mxu1 %v840_v14  ;;  %v869_v34 = vld [vmem:[#allocation4 + $0xc0] sm:$0xff]   ;;  %v873_v39 = vld [vmem:[#allocation4 + $0xc8] sm:$0xff]   ;;  %v877_v43 = vld [vmem:[#allocation4 + $0xd0] sm:$0xff]  }
  0x33   :  { %v49_v35 = vld [vmem:[%s1021_s0] sm:$0xf]  ;;  %v874_v40 = vld [vmem:[#allocation4 + $0x8] sm:$0xff]   ;;  %v878_v44 = vld [vmem:[#allocation4 + $0x10] sm:$0xff]   ;;  %v86_v4 = vsub.s32 0, %v85_v3  ;;  %v94_v5 = vsub.s32 2, %v85_v3 }
  0x34   :  { %v870_v36 = vld [vmem:[#allocation4] sm:$0xff]   ;;  %v875_v41 = vld [vmem:[#allocation4 + $0x88] sm:$0xff]   ;;  %v879_v45 = vld [vmem:[#allocation4 + $0x90] sm:$0xff]   ;;  %v90_v7 = vsub.s32 1, %v85_v3  ;;  %v98_v8 = vsub.s32 3, %v85_v3 }
  0x35   :  { %271 = vmatpush1.bf16.msra.mxu0 %v842_v15  ;;  %312 = vmatpush1.bf16.msra.mxu1 %v843_v16  ;;  %v871_v37 = vld [vmem:[#allocation4 + $0x80] sm:$0xff]   ;;  %v880_v46 = vld [vmem:[#allocation4 + $0x58] sm:$0xff]   ;;  %v888_v54 = vld [vmem:[#allocation4 + $0x68] sm:$0xff]  }
  0x36   :  { %272 = vmatprep.subr.bf16.mxu0 %v844_v17  ;;  %313 = vmatprep.subr.bf16.mxu1 %v846_v18  ;;  %v881_v47 = vld [vmem:[#allocation4 + $0xd8] sm:$0xff]   ;;  %v884_v50 = vld [vmem:[#allocation4 + $0x60] sm:$0xff]   ;;  %v889_v55 = vld [vmem:[#allocation4 + $0xe8] sm:$0xff]  }
  0x37   :  { %v882_v48 = vld [vmem:[#allocation4 + $0x18] sm:$0xff]   ;;  %v885_v51 = vld [vmem:[#allocation4 + $0xe0] sm:$0xff]   ;;  %v890_v56 = vld [vmem:[#allocation4 + $0x28] sm:$0xff]  }
  0x38   :  { %v883_v49 = vld [vmem:[#allocation4 + $0x98] sm:$0xff]   ;;  %v886_v52 = vld [vmem:[#allocation4 + $0x20] sm:$0xff]   ;;  %v891_v57 = vld [vmem:[#allocation4 + $0xa8] sm:$0xff]  }
  0x39   :  { %273 = vmatpush1.bf16.msra.mxu0 %v848_v19  ;;  %314 = vmatpush1.bf16.msra.mxu1 %v849_v20  ;;  %v887_v53 = vld [vmem:[#allocation4 + $0xa0] sm:$0xff]   ;;  %v892_v58 = vld [vmem:[#allocation4 + $0x70] sm:$0xff]   ;;  %v896_v62 = vld [vmem:[#allocation4 + $0x78] sm:$0xff]  }
  0x3a   :  { %274 = vmatprep.subr.bf16.mxu0 %v850_v21  ;;  %315 = vmatprep.subr.bf16.mxu1 %v852_v22  ;;  %v893_v59 = vld [vmem:[#allocation4 + $0xf0] sm:$0xff]   ;;  %v897_v63 = vld [vmem:[#allocation4 + $0xf8] sm:$0xff]   ;;  %v82_v6 = vld [vmem:[%s1023_s2] sm:$0xf] }
  0x3b   :  { %v894_v60 = vld [vmem:[#allocation4 + $0x30] sm:$0xff]   ;;  %v898_v0 = vld [vmem:[#allocation4 + $0x38] sm:$0xff]   ;;  %v87_v9 = vrot.slane %v82_v6, %v86_v4  ;;  %v95_v10 = vrot.slane %v82_v6, %v94_v5  ;;  %v91_v11 = vrot.slane %v82_v6, %v90_v7  ;;  %v99_v12 = vrot.slane %v82_v6, %v98_v8 }
  0x3c   :  { %v895_v61 = vld [vmem:[#allocation4 + $0xb0] sm:$0xff]   ;;  %v899_v1 = vld [vmem:[#allocation4 + $0xb8] sm:$0xff]  }
  0x3d   :  { %275 = vmatpush1.bf16.msra.mxu0 %v854_v23  ;;  %316 = vmatpush1.bf16.msra.mxu1 %v855_v24 }
  0x3e   :  { %276 = vmatprep.subr.bf16.mxu0 %v856_v25  ;;  %317 = vmatprep.subr.bf16.mxu1 %v858_v26 }
  0x41   :  { %277 = vmatpush1.bf16.msra.mxu0 %v860_v27  ;;  %318 = vmatpush1.bf16.msra.mxu1 %v861_v28 }
  0x42   :  { %278 = vmatprep.subr.bf16.mxu0 %v862_v29  ;;  %319 = vmatprep.subr.bf16.mxu1 %v864_v30 }
  0x45   :  { %279 = vmatpush1.bf16.msra.mxu0 %v866_v31  ;;  %320 = vmatpush1.bf16.msra.mxu1 %v867_v32 }
  0x46   :  { %769 = vmatprep.subr.bf16.mxu0 %v868_v33  ;;  %791 = vmatprep.subr.bf16.mxu1 %v869_v34 }
  0x48   :  { %297 = vmatmul.mubr.bf16.vlgmr.msra.gmra.mrb[0].mxu0 %v49_v35  ;;  %338 = vmatmul.mubr.bf16.vlgmr.msra.gmra.mrb[0].mxu1 %v49_v35  ;;  %v736_v35 = vld [vmem:[%s1025_s4] ss:$0 sm:$0xff] }
  0x49   :  { %770 = vmatpush3.bf16.msra.mxu0 %v870_v36  ;;  %792 = vmatpush3.bf16.msra.mxu1 %v871_v37 }
  0x4a   :  { %771 = vmatprep.subr.bf16.mxu0 %v872_v38  ;;  %793 = vmatprep.subr.bf16.mxu1 %v873_v39 }
  0x4d   :  { %772 = vmatpush3.bf16.msra.mxu0 %v874_v40  ;;  %794 = vmatpush3.bf16.msra.mxu1 %v875_v41 }
  0x4e   :  { %773 = vmatprep.subr.bf16.mxu0 %v876_v42  ;;  %795 = vmatprep.subr.bf16.mxu1 %v877_v43 }
  0x51   :  { %774 = vmatpush3.bf16.msra.mxu0 %v878_v44  ;;  %796 = vmatpush3.bf16.msra.mxu1 %v879_v45 }
  0x52   :  { %775 = vmatprep.subr.bf16.mxu0 %v880_v46  ;;  %797 = vmatprep.subr.bf16.mxu1 %v881_v47 }
  0x55   :  { %776 = vmatpush3.bf16.msra.mxu0 %v882_v48  ;;  %798 = vmatpush3.bf16.msra.mxu1 %v883_v49 }
  0x56   :  { %777 = vmatprep.subr.bf16.mxu0 %v884_v50  ;;  %799 = vmatprep.subr.bf16.mxu1 %v885_v51 }
  0x59   :  { %778 = vmatpush3.bf16.msra.mxu0 %v886_v52  ;;  %800 = vmatpush3.bf16.msra.mxu1 %v887_v53 }
  0x5a   :  { %779 = vmatprep.subr.bf16.mxu0 %v888_v54  ;;  %801 = vmatprep.subr.bf16.mxu1 %v889_v55 }
  0x5d   :  { %780 = vmatpush3.bf16.msra.mxu0 %v890_v56  ;;  %802 = vmatpush3.bf16.msra.mxu1 %v891_v57 }
  0x5e   :  { %781 = vmatprep.subr.bf16.mxu0 %v892_v58  ;;  %803 = vmatprep.subr.bf16.mxu1 %v893_v59 }
  0x61   :  { %782 = vmatpush3.bf16.msra.mxu0 %v894_v60  ;;  %804 = vmatpush3.bf16.msra.mxu1 %v895_v61 }
  0x62   :  { %783 = vmatprep.subr.bf16.mxu0 %v896_v62  ;;  %805 = vmatprep.subr.bf16.mxu1 %v897_v63 }
  0x65   :  { %784 = vmatpush3.bf16.msra.mxu0 %v898_v0  ;;  %806 = vmatpush3.bf16.msra.mxu1 %v899_v1 }
 0x11b   :  { %v298_v13 = vpop.f32.mrb[0].mxu0  ;;  %v339_v14 = vpop.f32.mrb[0].mxu1 }
 0x11c   :  { %v299_v15 = vadd.f32 %v298_v13, %v87_v9  ;;  %v340_v16 = vadd.f32 %v339_v14, %v95_v10  ;;  %v300_v17 = vpop.f32.mrb[1].mxu0  ;;  %v341_v18 = vpop.f32.mrb[1].mxu1 }
 0x11d   :  { %v301_v19 = vadd.f32 %v300_v17, %v91_v11  ;;  %v342_v20 = vadd.f32 %v341_v18, %v99_v12  ;;  %v302_v21 = vpop.f32.mrb[2].mxu0  ;;  %v343_v22 = vpop.f32.mrb[2].mxu1 }
 0x11e   :  { %v346_v23 = vmax.f32 %v299_v15, 0.0  ;;  %v348_v24 = vmax.f32 %v340_v16, 0.0  ;;  %v303_v25 = vpop.f32.mrb[3].mxu0  ;;  %v344_v26 = vpop.f32.mrb[3].mxu1 }
 0x11f   :  { %v347_v27 = vmax.f32 %v301_v19, 0.0  ;;  %v349_v28 = vmax.f32 %v342_v20, 0.0 }
 0x120   :  { %v352_v29 = vpack.c.bf16 %v348_v24, %v348_v24  ;;  %v350_v32 = vpack.c.bf16 %v346_v23, %v346_v23 }
 0x121   :  { %v351_v30 = vpack.c.bf16 %v347_v27, %v347_v27  ;;  %v353_v31 = vpack.c.bf16 %v349_v28, %v349_v28 }
 0x123   :  { %649 = vmatprep.mubr.bf16.mxu0 %v351_v30  ;;  %689 = vmatprep.mubr.bf16.mxu1 %v353_v31 }
 0x124   :  { %650 = vmatmul.mubr.bf16.vlgmr.msra.gmra.mrb[4].mxu0 %v350_v32  ;;  %690 = vmatmul.mubr.bf16.vlgmr.msra.gmra.mrb[4].mxu1 %v352_v29 }
 0x1f7   :  { %v785_v33 = vpop.f32.mrb[4].mxu0  ;;  %v807_v34 = vpop.f32.mrb[4].mxu1 }
 0x1f8   :  { %v786_v36 = vpop.f32.mrb[5].mxu0  ;;  %v808_v37 = vpop.f32.mrb[5].mxu1 }
 0x1f9   :  { %v787_v38 = vadd.f32 %v786_v36, %v785_v33  ;;  %v809_v39 = vadd.f32 %v808_v37, %v807_v34  ;;  %v788_v40 = vpop.f32.mrb[6].mxu0  ;;  %v810_v41 = vpop.f32.mrb[6].mxu1 }
 0x1fa   :  { %v789_v42 = vpop.f32.mrb[7].mxu0  ;;  %v811_v43 = vpop.f32.mrb[7].mxu1 }
 0x1fb   :  { %v652_v44 = vadd.f32 %v787_v38, %v736_v35 }
 0x1fd   :  { %v692_v45 = vadd.f32 %v809_v39, %v652_v44 }
 0x1ff   :  { %697 = vst [vmem:[%s1026_s5] sm:$0xff] %v692_v45 }
 0x200   :  { %702 = vsyncpa [#allocation3], 1 }
 0x201   :  { %703 = vsyncpa [#allocation5], 1 }

</bundles_post_ra>
